<compile_context>
chip_gen: v7x
topology: tpu7x:2x2x1
jax: 0.10.0
libtpu: 0.0.40
codegen_flags: <defaults>
</compile_context>

<pallas_src>
import functools

import jax
import jax.numpy as jnp
import numpy as np
from jax.experimental import pallas as pl
from jax.experimental.pallas import tpu as pltpu

NEG_SLOPE = 0.01  # torch F.leaky_relu default negative_slope


def _leaky(x):
    return jnp.where(x > 0, x, NEG_SLOPE * x)


def _round_up(x, m):
    return ((x + m - 1) // m) * m


# ---------------------------------------------------------------------------
# Kernel 1: cell MLP (lin1 -> leaky -> lin2 -> leaky) + mean over dim 1
# ---------------------------------------------------------------------------
def cell_kernel(x_ref, w1_ref, b1_ref, w2_ref, b2_ref, feat_ref, *, n_cells):
    n = pl.program_id(1)

    @pl.when(n == 0)
    def _():
        feat_ref[...] = jnp.zeros_like(feat_ref)

    x = x_ref[0]                                        # (tn, Dp) bf16
    # bf16 operands feed the MXU natively; accumulate in f32.
    h = jnp.dot(x, w1_ref[...], preferred_element_type=jnp.float32) + b1_ref[...]
    h = _leaky(h)                                       # f32
    a = jnp.dot(h.astype(jnp.bfloat16), w2_ref[...],
                preferred_element_type=jnp.float32) + b2_ref[...]
    a = _leaky(a)                                       # (tn, H) f32

    # Partial sum over this tile of cells; keepdims keeps it 2-D / lane-dense.
    partial = jnp.sum(a, axis=0, keepdims=True)         # (1, H) f32
    feat_ref[0] += partial

    @pl.when(n == pl.num_programs(1) - 1)
    def _():
        # mean over the cell dimension, in f32.
        feat_ref[...] = feat_ref[...] * jnp.float32(1.0 / n_cells)


# ---------------------------------------------------------------------------
# Kernel 2: lin3 + projection MLP (3 x Linear + LeakyReLU), whole-VMEM
# ---------------------------------------------------------------------------
def head_kernel(f_ref, w3_ref, b3_ref, pw1_ref, pb1_ref, pw2_ref, pb2_ref,
                pw3_ref, pb3_ref, out_ref, feat_ref):
    f = f_ref[...]                                      # (B, H) f32
    features = _leaky(jnp.dot(f, w3_ref[...],
                              preferred_element_type=jnp.float32) + b3_ref[...])
    p = _leaky(jnp.dot(features, pw1_ref[...],
                       preferred_element_type=jnp.float32) + pb1_ref[...])
    p = _leaky(jnp.dot(p, pw2_ref[...],
                       preferred_element_type=jnp.float32) + pb2_ref[...])
    o = _leaky(jnp.dot(p, pw3_ref[...],
                       preferred_element_type=jnp.float32) + pb3_ref[...])
    out_ref[...] = o.astype(out_ref.dtype)
    feat_ref[...] = features.astype(feat_ref.dtype)


# ---------------------------------------------------------------------------
# Wrapper
# ---------------------------------------------------------------------------
def _choose_tn(n, cap=512):
    """Largest multiple of 8 dividing n, capped for VMEM budget; else n."""
    best = None
    for t in range(8, min(n, cap) + 1, 8):
        if n % t == 0:
            best = t
    return best if best is not None else n


def mlpmean_forward(x, params, *, tn=None, vmem_limit_bytes=48 * 1024 * 1024):
    """Returns (out (B, output_dim), features (B, latent_dim)) like MLPmean."""
    B, N, D_in = x.shape
    w1, b1, w2, b2 = params['cell']
    w3, b3, pw1, pb1, pw2, pb2, pw3, pb3 = params['head']
    H = w1.shape[1]
    L = w3.shape[1]
    O = pw3.shape[1]

    if tn is None:
        tn = _choose_tn(N)                      # swept/capped tile, not tn=N
    assert N % tn == 0, "tn must divide N"
    assert tn % 8 == 0 or tn == N, "tn must be a multiple of 8 (or equal N)"
    nt = N // tn

    # Pad the first contraction dim to a lane-aligned multiple of 128
    # (e.g. 1938 -> 2048): unmasked x-tile DMA and a full MXU K dimension.
    Dp = _round_up(D_in, 128)
    if Dp != D_in:
        x = jnp.pad(x, ((0, 0), (0, 0), (0, Dp - D_in)))
        w1 = jnp.pad(w1, ((0, Dp - D_in), (0, 0)))

    # Cast MXU operands to bf16 once here; biases & accumulator stay f32.
    x_bf = x.astype(jnp.bfloat16)
    w1_bf = w1.astype(jnp.bfloat16)
    w2_bf = w2.astype(jnp.bfloat16)

    grid_spec = pltpu.PrefetchScalarGridSpec(
        num_scalar_prefetch=0,
        grid=(B, nt),                                        # reduction axis last
        in_specs=[
            pl.BlockSpec((1, tn, Dp), lambda b, n: (b, n, 0)),   # x tile (bf16)
            # Constant-index operands: fetched once, resident in VMEM.
            pl.BlockSpec((Dp, H), lambda b, n: (0, 0)),          # w1 (bf16)
            pl.BlockSpec((1, H),  lambda b, n: (0, 0)),          # b1 (f32)
            pl.BlockSpec((H, H),  lambda b, n: (0, 0)),          # w2 (bf16)
            pl.BlockSpec((1, H),  lambda b, n: (0, 0)),          # b2 (f32)
        ],
        # Same output block across the reduction axis -> resident accumulator.
        out_specs=pl.BlockSpec((1, 1, H), lambda b, n: (b, 0, 0)),
    )

    feats = pl.pallas_call(
        functools.partial(cell_kernel, n_cells=N),
        grid_spec=grid_spec,
        out_shape=jax.ShapeDtypeStruct((B, 1, H), jnp.float32),
        compiler_params=pltpu.CompilerParams(
            dimension_semantics=("parallel", "arbitrary"),
            vmem_limit_bytes=vmem_limit_bytes),
    )(x_bf, w1_bf, b1, w2_bf, b2)

    f = feats.reshape(B, H)                  # mean(..., keepdim).view(B, -1)

    vmem = pl.BlockSpec(memory_space=pltpu.MemorySpace.VMEM)
    out, features = pl.pallas_call(
        head_kernel,
        out_shape=(jax.ShapeDtypeStruct((B, O), jnp.float32),
                   jax.ShapeDtypeStruct((B, L), jnp.float32)),
        in_specs=[vmem] * 9,
        out_specs=(vmem, vmem),
    )(f, w3, b3, pw1, pb1, pw2, pb2, pw3, pb3)

    return out, features


# ---------------------------------------------------------------------------
# Deterministic params (torch nn.Linear-style uniform(-1/sqrt(fan_in), ...)),
# weights stored as (in, out) (transposed vs torch's (out, in)).
# ---------------------------------------------------------------------------
def init_params(key, input_dim=1938, latent_dim=256, output_dim=128, k=1):
    H = int(256 // k)
    P = int(128 // k)

    def linear(kk, fan_in, fan_out):
        kw, kb = jax.random.split(kk)
        bound = 1.0 / np.sqrt(fan_in)
        w = jax.random.uniform(kw, (fan_in, fan_out), jnp.float32, -bound, bound)
        b = jax.random.uniform(kb, (1, fan_out), jnp.float32, -bound, bound)
        return w, b

    keys = jax.random.split(key, 6)
    w1, b1 = linear(keys[0], input_dim, H)
    w2, b2 = linear(keys[1], H, H)
    w3, b3 = linear(keys[2], H, latent_dim)
    pw1, pb1 = linear(keys[3], latent_dim, P)
    pw2, pb2 = linear(keys[4], P, P)
    pw3, pb3 = linear(keys[5], P, output_dim)
    return {'cell': (w1, b1, w2, b2),
            'head': (w3, b3, pw1, pb1, pw2, pb2, pw3, pb3)}


# Pure-JAX f32 reference (mirrors the PyTorch forward exactly)
def ref_forward(x, params):
    w1, b1, w2, b2 = params['cell']
    w3, b3, pw1, pb1, pw2, pb2, pw3, pb3 = params['head']
    h = _leaky(x @ w1 + b1)
    h = _leaky(h @ w2 + b2)
    f = jnp.mean(h, axis=1)                  # mean(dim=1, keepdim).view(B, -1)
    features = _leaky(f @ w3 + b3)
    p = _leaky(features @ pw1 + pb1)
    p = _leaky(p @ pw2 + pb2)
    o = _leaky(p @ pw3 + pb3)
    return o, features


if __name__ == "__main__":
    # Small shapes consistent with MLPmean(input_dim=1938, latent=256, out=128),
    # scaled down (k=2 -> hidden 128, proj 64); D_in=200 exercises lane padding.
    B, N = 2, 16
    input_dim, latent_dim, output_dim, k = 200, 128, 64, 2

    key = jax.random.PRNGKey(0)
    kx, kp = jax.random.split(key)
    x = jax.random.normal(kx, (B, N, input_dim), jnp.float32)
    params = init_params(kp, input_dim, latent_dim, output_dim, k)

    out, features = mlpmean_forward(x, params, tn=8)   # 2 reduction steps
    out = jax.block_until_ready(out)
    features = jax.block_until_ready(features)

    out_ref, feat_ref = ref_forward(x, params)
    # bf16 MXU operands with f32 accumulation -> compare loosely vs f32 ref.
    np.testing.assert_allclose(np.asarray(features), np.asarray(feat_ref),
                               rtol=5e-2, atol=5e-2)
    np.testing.assert_allclose(np.asarray(out), np.asarray(out_ref),
                               rtol=5e-2, atol=5e-2)

    print("KERNEL_OK")
</pallas_src>

<mosaic_0001>
module attributes {stable_mosaic.version = 11 : i64} {
  func.func @cell_kernel(%arg0: i32, %arg1: i32, %arg2: memref<1x8x256xbf16, #tpu.memory_space<vmem>>, %arg3: memref<256x128xbf16, #tpu.memory_space<vmem>>, %arg4: memref<1x128xf32, #tpu.memory_space<vmem>>, %arg5: memref<128x128xbf16, #tpu.memory_space<vmem>>, %arg6: memref<1x128xf32, #tpu.memory_space<vmem>>, %arg7: memref<1x1x128xf32, #tpu.memory_space<vmem>>) attributes {dimension_semantics = [#tpu.dimension_semantics<parallel>, #tpu.dimension_semantics<arbitrary>], iteration_bounds = array<i64: 2, 2>, scalar_prefetch = 0 : i64, scratch_operands = 0 : i64, tpu.core_type = #tpu.core_type<tc>, window_params = [{transform_indices = @transform_0, window_bounds = array<i64: 1, 8, 256>}, {pipeline_mode = #tpu.pipeline_mode<synchronous>, transform_indices = @transform_1, window_bounds = array<i64: 256, 128>}, {pipeline_mode = #tpu.pipeline_mode<synchronous>, transform_indices = @transform_2, window_bounds = array<i64: 1, 128>}, {pipeline_mode = #tpu.pipeline_mode<synchronous>, transform_indices = @transform_3, window_bounds = array<i64: 128, 128>}, {pipeline_mode = #tpu.pipeline_mode<synchronous>, transform_indices = @transform_4, window_bounds = array<i64: 1, 128>}, {transform_indices = @transform_5, window_bounds = array<i64: 1, 1, 128>}]} {
    %c0_i32 = arith.constant 0 : i32
    %0 = arith.cmpi eq, %arg1, %c0_i32 : i32
    %1 = arith.extui %0 : i1 to i32
    %c0_i32_0 = arith.constant 0 : i32
    %2 = arith.cmpi ne, %1, %c0_i32_0 : i32
    scf.if %2 {
      %cst_24 = arith.constant 0.000000e+00 : f32
      %37 = vector.broadcast %cst_24 : f32 to vector<1x1x128xf32>
      %c0_25 = arith.constant 0 : index
      %c0_26 = arith.constant 0 : index
      %c0_27 = arith.constant 0 : index
      %38 = vector.load %arg7[%c0_25, %c0_26, %c0_27] : memref<1x1x128xf32, #tpu.memory_space<vmem>>, vector<1x1x128xf32>
      tpu.vector_store %arg7[%c0_25, %c0_26, %c0_27], %37 {strides = array<i32>} : memref<1x1x128xf32, #tpu.memory_space<vmem>>, vector<1x1x128xf32>,
    } else {
    }
    %c0 = arith.constant 0 : index
    %c0_1 = arith.constant 0 : index
    %c0_2 = arith.constant 0 : index
    %3 = vector.load %arg2[%c0, %c0_1, %c0_2] : memref<1x8x256xbf16, #tpu.memory_space<vmem>>, vector<1x8x256xbf16>
    %4 = vector.shape_cast %3 : vector<1x8x256xbf16> to vector<8x256xbf16>
    %c0_3 = arith.constant 0 : index
    %c0_4 = arith.constant 0 : index
    %5 = vector.load %arg3[%c0_3, %c0_4] : memref<256x128xbf16, #tpu.memory_space<vmem>>, vector<256x128xbf16>
    %cst = arith.constant dense<0.000000e+00> : vector<8x128xf32>
    %6 = tpu.matmul %4, %5, %cst {dimension_numbers = #tpu.dot_dimension_numbers<[1], [0], [0], [1], [0, 0, 1, 1], [], []>} : vector<8x256xbf16>, vector<256x128xbf16>, vector<8x128xf32> -> vector<8x128xf32>
    %c0_5 = arith.constant 0 : index
    %c0_6 = arith.constant 0 : index
    %7 = vector.load %arg4[%c0_5, %c0_6] : memref<1x128xf32, #tpu.memory_space<vmem>>, vector<1x128xf32>
    %8 = vector.broadcast %7 : vector<1x128xf32> to vector<8x128xf32>
    %9 = arith.addf %6, %8 : vector<8x128xf32>
    %cst_7 = arith.constant 0.000000e+00 : f32
    %10 = vector.broadcast %cst_7 : f32 to vector<8x128xf32>
    %11 = arith.cmpf ogt, %9, %10 : vector<8x128xf32>
    %cst_8 = arith.constant 0.00999999977 : f32
    %12 = vector.broadcast %cst_8 : f32 to vector<8x128xf32>
    %13 = arith.mulf %12, %9 : vector<8x128xf32>
    %14 = arith.select %11, %9, %13 : vector<8x128xi1>, vector<8x128xf32>
    %15 = arith.truncf %14 : vector<8x128xf32> to vector<8x128xbf16>
    %c0_9 = arith.constant 0 : index
    %c0_10 = arith.constant 0 : index
    %16 = vector.load %arg5[%c0_9, %c0_10] : memref<128x128xbf16, #tpu.memory_space<vmem>>, vector<128x128xbf16>
    %cst_11 = arith.constant dense<0.000000e+00> : vector<8x128xf32>
    %17 = tpu.matmul %15, %16, %cst_11 {dimension_numbers = #tpu.dot_dimension_numbers<[1], [0], [0], [1], [0, 0, 1, 1], [], []>} : vector<8x128xbf16>, vector<128x128xbf16>, vector<8x128xf32> -> vector<8x128xf32>
    %c0_12 = arith.constant 0 : index
    %c0_13 = arith.constant 0 : index
    %18 = vector.load %arg6[%c0_12, %c0_13] : memref<1x128xf32, #tpu.memory_space<vmem>>, vector<1x128xf32>
    %19 = vector.broadcast %18 : vector<1x128xf32> to vector<8x128xf32>
    %20 = arith.addf %17, %19 : vector<8x128xf32>
    %cst_14 = arith.constant 0.000000e+00 : f32
    %21 = vector.broadcast %cst_14 : f32 to vector<8x128xf32>
    %22 = arith.cmpf ogt, %20, %21 : vector<8x128xf32>
    %cst_15 = arith.constant 0.00999999977 : f32
    %23 = vector.broadcast %cst_15 : f32 to vector<8x128xf32>
    %24 = arith.mulf %23, %20 : vector<8x128xf32>
    %25 = arith.select %22, %20, %24 : vector<8x128xi1>, vector<8x128xf32>
    %cst_16 = arith.constant dense<0.000000e+00> : vector<128xf32>
    %26 = vector.multi_reduction <add>, %25, %cst_16 [0] : vector<8x128xf32> to vector<128xf32>
    %27 = vector.shape_cast %26 : vector<128xf32> to vector<1x128xf32>
    %c0_17 = arith.constant 0 : index
    %c0_18 = arith.constant 0 : index
    %c0_19 = arith.constant 0 : index
    %28 = vector.load %arg7[%c0_17, %c0_18, %c0_19] : memref<1x1x128xf32, #tpu.memory_space<vmem>>, vector<1x1x128xf32>
    %29 = vector.shape_cast %28 : vector<1x1x128xf32> to vector<1x128xf32>
    %30 = arith.addf %29, %27 : vector<1x128xf32>
    %c0_20 = arith.constant 0 : index
    %c0_21 = arith.constant 0 : index
    %c0_22 = arith.constant 0 : index
    %31 = vector.load %arg7[%c0_20, %c0_21, %c0_22] : memref<1x1x128xf32, #tpu.memory_space<vmem>>, vector<1x1x128xf32>
    %32 = vector.shape_cast %31 : vector<1x1x128xf32> to vector<1x128xf32>
    %33 = vector.shape_cast %30 : vector<1x128xf32> to vector<1x1x128xf32>
    tpu.vector_store %arg7[%c0_20, %c0_21, %c0_22], %33 {strides = array<i32>} : memref<1x1x128xf32, #tpu.memory_space<vmem>>, vector<1x1x128xf32>,
    %c1_i32 = arith.constant 1 : i32
    %34 = arith.cmpi eq, %arg1, %c1_i32 : i32
    %35 = arith.extui %34 : i1 to i32
    %c0_i32_23 = arith.constant 0 : i32
    %36 = arith.cmpi ne, %35, %c0_i32_23 : i32
    scf.if %36 {
      %c0_24 = arith.constant 0 : index
      %c0_25 = arith.constant 0 : index
      %c0_26 = arith.constant 0 : index
      %37 = vector.load %arg7[%c0_24, %c0_25, %c0_26] : memref<1x1x128xf32, #tpu.memory_space<vmem>>, vector<1x1x128xf32>
      %cst_27 = arith.constant 6.250000e-02 : f32
      %38 = vector.broadcast %cst_27 : f32 to vector<1x1x128xf32>
      %39 = arith.mulf %37, %38 : vector<1x1x128xf32>
      %c0_28 = arith.constant 0 : index
      %c0_29 = arith.constant 0 : index
      %c0_30 = arith.constant 0 : index
      %40 = vector.load %arg7[%c0_28, %c0_29, %c0_30] : memref<1x1x128xf32, #tpu.memory_space<vmem>>, vector<1x1x128xf32>
      tpu.vector_store %arg7[%c0_28, %c0_29, %c0_30], %39 {strides = array<i32>} : memref<1x1x128xf32, #tpu.memory_space<vmem>>, vector<1x1x128xf32>,
    } else {
    }
    return
  }
  func.func @transform_0(%arg0: i32, %arg1: i32) -> (i32, i32, i32) {
    %c0_i32 = arith.constant 0 : i32
    %c0_i32_0 = arith.constant 0 : i32
    return %arg0, %arg1, %c0_i32 : i32, i32, i32
  }
  func.func @transform_1(%arg0: i32, %arg1: i32) -> (i32, i32) {
    %c0_i32 = arith.constant 0 : i32
    %c0_i32_0 = arith.constant 0 : i32
    %c0_i32_1 = arith.constant 0 : i32
    return %c0_i32, %c0_i32_0 : i32, i32
  }
  func.func @transform_2(%arg0: i32, %arg1: i32) -> (i32, i32) {
    %c0_i32 = arith.constant 0 : i32
    %c0_i32_0 = arith.constant 0 : i32
    %c0_i32_1 = arith.constant 0 : i32
    return %c0_i32, %c0_i32_0 : i32, i32
  }
  func.func @transform_3(%arg0: i32, %arg1: i32) -> (i32, i32) {
    %c0_i32 = arith.constant 0 : i32
    %c0_i32_0 = arith.constant 0 : i32
    %c0_i32_1 = arith.constant 0 : i32
    return %c0_i32, %c0_i32_0 : i32, i32
  }
  func.func @transform_4(%arg0: i32, %arg1: i32) -> (i32, i32) {
    %c0_i32 = arith.constant 0 : i32
    %c0_i32_0 = arith.constant 0 : i32
    %c0_i32_1 = arith.constant 0 : i32
    return %c0_i32, %c0_i32_0 : i32, i32
  }
  func.func @transform_5(%arg0: i32, %arg1: i32) -> (i32, i32, i32) {
    %c0_i32 = arith.constant 0 : i32
    %c0_i32_0 = arith.constant 0 : i32
    %c0_i32_1 = arith.constant 0 : i32
    return %arg0, %c0_i32, %c0_i32_0 : i32, i32, i32
  }
}

</mosaic_0001>

<bundles_post_ra>
// kernel: tpu_custom_call.1
= control target key start
LH: loop header
LB: loop body
LE: loop exit
PB: predicated region body
PF: predicated region fallthrough
CT: control target
= control target key end

     0   :  { %s1533_s0 = inlined_call_operand.hbm [shape: bf16[2,16,256], index: 0, kind: input, shape index: {}]   ;;  %s1534_s1 = inlined_call_operand.hbm [shape: bf16[256,128], index: 1, kind: input, shape index: {}]   ;;  %s1535_s2 = inlined_call_operand.vmem [shape: f32[1,128], index: 2, kind: input, shape index: {}]   ;;  %s1536_s3 = inlined_call_operand.hbm [shape: bf16[128,128], index: 3, kind: input, shape index: {}]   ;;  %s1537_s4 = inlined_call_operand.vmem [shape: f32[1,128], index: 4, kind: input, shape index: {}]   ;;  %s1538_s5 = inlined_call_operand.hbm [shape: f32[2,1,128], index: 5, kind: output, shape index: {}]  }
   0x1   :  { %1551 = sst [smem:[#allocation18_spill]] %s1534_s1 }
   0x2   :  { %1552 = sst [smem:[#allocation19_spill]] %s1535_s2 }
   0x3   :  { %1553 = sst [smem:[#allocation20_spill]] %s1536_s3 }
   0x4   :  { %1554 = sst [smem:[#allocation21_spill]] %s1537_s4 }
   0x5   :  { %1555 = sst [smem:[#allocation22_spill]] %s1538_s5 }
   0x6   :  { %10 = vsyncpa [#allocation3], 0 }
   0x7   :  { %12 = vsyncpa [#allocation3 + $0x1], 0 }
   0x8   :  { %13 = vsyncpa [#allocation6], 0 }
   0x9   :  { %14 = vsyncpa [#allocation4], 0 }
   0xa   :  { %16 = vsyncpa [#allocation4 + $0x1], 0  ;;  %s1225_s18 = smov 0   ;;  %s1227_s19 = smov 0  }
   0xb   :  { %s1229_s20 = smov 0   ;;  %s1231_s21 = smov 0  }
   0xc   :  { %s1233_s22 = smov 0   ;;  %s1235_s23 = smov 0  }
   0xd   :  { %s1237_s24 = smov 0   ;;  %s1239_s25 = smov 0  }
   0xe   :  { %s1241_s26 = smov 0   ;;  %s1243_s27 = smov 0  }
   0xf   :  { %s1245_s28 = smov 0  }
  0x10 LB: > { %1556 = sst [smem:[#allocation12_spill]] %s1144_s18  ;;  %s720_s29 = sadd.s32 4294967295, %s1184_s28   ;;  %s1184_s28 = sphi %s1245_s28, %s22_s28   ;;  %s1180_s27 = sphi %s1243_s27, %s1593_s27   ;;  %s1176_s26 = sphi %s1241_s26, %s1585_s26   ;;  %s1172_s25 = sphi %s1239_s25, %s1592_s25   ;;  %s1168_s24 = sphi %s1237_s24, %s1584_s24   ;;  %s1164_s23 = sphi %s1235_s23, %s1591_s23   ;;  %s1160_s22 = sphi %s1233_s22, %s1590_s22   ;;  %s1156_s21 = sphi %s1231_s21, %s1589_s21   ;;  %s1152_s20 = sphi %s1229_s20, %s1588_s20   ;;  %s1148_s19 = sphi %s1227_s19, %s1587_s19   ;;  %s1144_s18 = sphi %s1225_s18, %s1586_s18  }
  0x11   : > { %1557 = sst [smem:[#allocation13_spill]] %s1172_s25  ;;  %s721_s30 = sadd.s32 4294967294, %s1184_s28  }
  0x12   : > { %1558 = sst [smem:[#allocation14_spill]] %s1176_s26  ;;  %p56_p0 = scmp.ne.s32.totalorder %s1160_s22, %s1156_s21 }
  0x13   : > { %p1281_p1 = scmp.eq.s32.totalorder %s720_s29, 0  ;;  %p163_p2 = scmp.ne.s32.totalorder %s1152_s20, %s1148_s19 }
  0x14   : > { %p164_p3 = scmp.eq.s32.totalorder %s720_s29, 3  ;;  %p169_p5 = scmp.ne.s32.totalorder %s1148_s19, %s1144_s18 }
  0x15   : > { %s1559_s6 = scalar_select %p1281_p1, 1, 0 }
  0x16   : > { %p1289_p4 = por %p1281_p1, %p56_p0  ;;  %p1295_p6 = por %p164_p3, %p163_p2 }
  0x17   : > { %p170_p7 = scmp.eq.s32.totalorder %s721_s30, 3  ;;  %p722_p8 = scmp.ge.s32.totalorder %s1184_s28, 1 }
  0x18   : > { %s1560_s7 = scalar_select %p1289_p4, 1, 0 }
  0x19   : > { %s1561_s8 = scalar_select %p1295_p6, 1, 0 }
  0x1a   : > { %p177_p9 = scmp.lt.s32.totalorder %s1184_s28, 5  ;;  %p1301_p10 = por %p170_p7, %p169_p5 }
  0x1b   : > { %1562 = sst [smem:[#allocation15_spill]] %s1561_s8  ;;  %s1186_s11 = smov [#allocation5]  }
  0x1c   : > { %s1563_s9 = scalar_select %p1301_p10, 1, 0 }
  0x1d   : > { %p1305_p11 = pnand %p722_p8, %p177_p9  ;;  %s189_s12 = sshll.u32 %s1186_s11, 4  ;;  %s190_s12 = int_to_ptr.vmem [resolvable:$true] %s189_s12 }
  0x1e   : > { %1564 = sst [smem:[#allocation16_spill]] %s1563_s9  ;;  %s1187_s14 = smov [#allocation7]  }
  0x1f   : > { %s1565_s10 = scalar_select %p1305_p11, 1, 0 }
  0x20   : > { %p830_p12 = pneg %p1305_p11  ;;  %s205_s15 = sshll.u32 %s1187_s14, 4  ;;  %s1317_s15 = int_to_ptr.vmem [resolvable:$true] %s205_s15 }
  0x21   : > { %s1567_s1 = sld [smem:[#allocation18_spill]] }
  0x22   : > { %p1313_p13 = pnand %p830_p12, %p1281_p1 }
  0x24   : > { %p974_p2 = pneg %p1313_p13 }
  0x27   : > { %s972_s21 = scalar_lea.hbm %s1567_s1, 2048 }
  0x28   : > { %p973_p0 = scmp.ne.s32.totalorder %s1567_s1, %s972_s21  ;;  %p979_p7 = scmp.lt.u32.totalorder %s972_s21, %s1567_s1 }
  0x2a   : > { %p975_p3 = pnand %p974_p2, %p973_p0 }
  0x2c   : > { %p976_p5 = pneg %p975_p3 }
  0x2e   : > { %p981_p8 = pnand %p979_p7, %p976_p5 }
  0x30   : > { %984 = shalt.err (!%p981_p8)
}
  0x31   : > { %s985_s14 = scalar_lea.vmem %s190_s12, 2048  ;;  %p993_p6 = scmp.lt.s32.totalorder %s190_s12, %s190_s12 }
  0x32   : > { %p986_p9 = scmp.ne.s32.totalorder %s190_s12, %s985_s14  ;;  %p994_p1 = scmp.lt.s32.totalorder %s985_s14, %s985_s14 }
  0x34   : > { %p988_p12 = pnand %p986_p9, %p974_p2  ;;  %p995_p4 = por %p994_p1, %p993_p6 }
  0x36   : > { %p989_p10 = pneg %p988_p12 }
  0x38   : > { %p996_p11 = pnand %p995_p4, %p989_p10 }
  0x3a   : > { %999 = shalt.err (!%p996_p11)
}
  0x3b   : > { %s1188_s16 = smov 64   ;;  %s1189_s17 = smov 4  }
  0x3c   : > { %833 = dma.hbm_to_vmem [thread:$0]  (!%p1313_p13), %s1567_s1, 2048, %s190_s12, [#allocation6], %s1188_s16, %s1188_s16, %s1189_s17  }
  0x3d   : > { %s1568_s3 = sld [smem:[#allocation20_spill]] }
  0x43   : > { %s1000_s11 = scalar_lea.hbm %s1568_s3, 1024 }
  0x44   : > { %p1001_p0 = scmp.ne.s32.totalorder %s1568_s3, %s1000_s11  ;;  %p1007_p6 = scmp.lt.u32.totalorder %s1000_s11, %s1568_s3 }
  0x46   : > { %p1003_p1 = pnand %p1001_p0, %p974_p2 }
  0x48   : > { %p1004_p4 = pneg %p1003_p1 }
  0x4a   : > { %p1009_p10 = pnand %p1007_p6, %p1004_p4 }
  0x4c   : > { %1012 = shalt.err (!%p1009_p10)
}
  0x4d   : > { %s1013_s12 = scalar_lea.vmem %s1317_s15, 1024  ;;  %p1021_p7 = scmp.lt.s32.totalorder %s1317_s15, %s1317_s15 }
  0x4e   : > { %p1014_p11 = scmp.ne.s32.totalorder %s1317_s15, %s1013_s12  ;;  %p1022_p8 = scmp.lt.s32.totalorder %s1013_s12, %s1013_s12 }
  0x50   : > { %p1016_p3 = pnand %p1014_p11, %p974_p2  ;;  %p1023_p9 = por %p1022_p8, %p1021_p7 }
  0x52   : > { %p1017_p5 = pneg %p1016_p3 }
  0x54   : > { %p1024_p12 = pnand %p1023_p9, %p1017_p5 }
  0x56   : > { %1027 = shalt.err (!%p1024_p12)
}
  0x57   : > { %836 = dma.hbm_to_vmem [thread:$0]  (!%p1313_p13), %s1568_s3, 1024, %s1317_s15, [#allocation6], %s1188_s16, %s1188_s16, %s1189_s17  }
  0x58   : > { %s31_s8 = sadd.s32 1, %s1176_s26  ;;  %s34_s13 = sadd.s32 1, %s1180_s27 }
  0x59   : > { %p32_p2 = scmp.ge.s32.totalorder %s31_s8, 2  ;;  %s43_s9 = sadd.s32 1, %s1164_s23 }
  0x5a   : > { %p50_p0 = scmp.ne.s32.totalorder %s1164_s23, %s1160_s22  ;;  %p51_p1 = scmp.eq.s32.totalorder %s1184_s28, 0 }
  0x5b   : > { %s1595_s8 = smov (%p32_p2, %s31_s8), 0  ;;  %s1597_s13 = smov (!%p32_p2, %s34_s13), %s1180_s27 }
  0x5c   : > { %1569 = sst [smem:[#allocation17_spill]] %s1595_s8  ;;  %s39_s21 = ssub.s32 %s1176_s26, %s1595_s8 }
  0x5d   : > { %p36_p4 = scmp.ge.s32.totalorder %s1597_s13, 2  ;;  %s153_s29 = sadd.s32 1, %s1152_s20 }
  0x5e   : > { %p1378_p6 = por %p51_p1, %p50_p0  ;;  %p847_p13 = scmp.lt.s32.totalorder %s1184_s28, 4 }
  0x5f   : > { %s1599_s13 = smov (%p36_p4, %s1597_s13), 0  ;;  %s222_s16 = sand.u32 1, %s1164_s23  }
  0x60   : > { %s727_s17 = sshll.u32 %s1176_s26, 1  ;;  %s38_s30 = ssub.s32 %s1180_s27, %s1599_s13 }
  0x61   : > { %s40_s11 = sor.u32 %s39_s21, %s38_s30  ;;  %p151_p10 = scmp.eq.s32.totalorder %s38_s30, 0 }
  0x62   : > { %p41_p11 = scmp.eq.s32.totalorder %s40_s11, 0  ;;  %s726_s14 = sshll.u32 %s222_s16, 3 }
  0x63   : > { %s1390_s12 = scalar_select %p151_p10, %s1152_s20, %s153_s29  }
  0x64   : > { %s1393_s5 = scalar_select %p41_p11, %s1164_s23, %s43_s9  }
  0x65   : > { %s728_s18 = sshll.u32 %s1180_s27, 2  ;;  %s226_s3 = scalar_lea.vmem [#allocation2], %s726_s14 }
  0x66   : > { %s232_s1 = sadd.s32 %s728_s18, %s727_s17  ;;  %s236_s8 = sshll.u32 %s226_s3, 4  ;;  %s1396_s8 = int_to_ptr.vmem [resolvable:$true] %s236_s8 }
  0x67   : > { %s729_s25 = sshll.u32 %s232_s1, 6  ;;  %p1407_p3 = pnand %p847_p13, %p1378_p6 }
  0x68   : > { %s1401_s26 = scalar_lea.hbm %s1533_s0, %s729_s25  ;;  %s223_s1 = scalar_lea.sflag [#allocation3], %s222_s16 }
  0x69   : > { %s1028_s3 = scalar_lea.hbm %s1401_s26, 128  ;;  %p1030_p7 = pneg %p1407_p3 }
  0x6a   : > { %p1029_p5 = scmp.ne.s32.totalorder %s1401_s26, %s1028_s3  ;;  %s1033_s25 = scalar_lea.hbm %s1533_s0, 512 }
  0x6b   : > { %p1034_p12 = scmp.lt.u32.totalorder %s1401_s26, %s1533_s0  ;;  %p1035_p2 = scmp.lt.u32.totalorder %s1033_s25, %s1028_s3 }
  0x6c   : > { %p1031_p8 = pnand %p1030_p7, %p1029_p5  ;;  %p1037_p1 = scmp.lt.u32.totalorder %s1028_s3, %s1401_s26 }
  0x6d   : > { %p1036_p0 = por %p1035_p2, %p1034_p12 }
  0x6e   : > { %p1032_p9 = pneg %p1031_p8 }
  0x6f   : > { %p1038_p4 = por %p1037_p1, %p1036_p0 }
  0x71   : > { %p1039_p6 = pnand %p1038_p4, %p1032_p9 }
  0x73   : > { %1042 = shalt.err (!%p1039_p6)
}
  0x74   : > { %s1043_s15 = scalar_lea.vmem %s1396_s8, 128  ;;  %s1190_s16 = smov [#allocation2]  }
  0x75   : > { %p1044_p13 = scmp.ne.s32.totalorder %s1396_s8, %s1043_s15  ;;  %s1048_s17 = sshll.u32 %s1190_s16, 4  ;;  %s1049_s17 = int_to_ptr.vmem [resolvable:$false] %s1048_s17 }
  0x76   : > { %s1050_s30 = scalar_lea.vmem %s1049_s17, 256  ;;  %p1051_p5 = scmp.lt.s32.totalorder %s1396_s8, %s1049_s17 }
  0x77   : > { %p1046_p10 = pnand %p1044_p13, %p1030_p7  ;;  %p1052_p8 = scmp.lt.s32.totalorder %s1050_s30, %s1043_s15 }
  0x79   : > { %p1047_p11 = pneg %p1046_p10  ;;  %p1053_p12 = por %p1052_p8, %p1051_p5 }
  0x7b   : > { %p1054_p2 = pnand %p1053_p12, %p1047_p11 }
  0x7d   : > { %1057 = shalt.err (!%p1054_p2)
}
  0x7e   : > { %840 = dma.hbm_to_vmem [thread:$0]  (!%p1407_p3), %s1401_s26, 128, %s1396_s8, %s223_s1  }
  0x7f   : > { %p1572_p9 = scmp.ne.s32.totalorder %s1565_s10, 0 }
  0x80   : > { %s247_s11 = sand.u32 (!%p1572_p9), 1, %s1160_s22   ;;  %p1573_p7 = scmp.ne.s32.totalorder (!%p1572_p9), %s1560_s7, 0 }
  0x81   : > { %245 = sbr.rel (%p1572_p9) target bundleno = 673 (0x2a1), region = 40  ;;  %s1439_s14 = sshll.u32 (!%p1572_p9), %s247_s11, 3 }
  0x82   : > { %s248_s18 = scalar_lea.sflag (!%p1572_p9), [#allocation3], %s247_s11  ;;  %s251_s3 = scalar_lea.vmem (!%p1572_p9), [#allocation2], %s1439_s14 }
  0x88   : > { %1131 = dma.done.wait (%p1573_p7), %s248_s18, 128  }
  0x89   : > { %1133 = vsyncadd (%p1573_p7), %s248_s18, 4294967168  ;;  %p1574_p0 = scmp.ne.s32.totalorder %s1559_s6, 0 }
  0x8b   : > { %1135 = dma.done.wait (%p1574_p0), [#allocation6], 3072  }
  0x8c   : > { %1137 = vsyncadd (%p1574_p0), [#allocation6], 4294964224  ;;  %s283_s26 = sand.u32 1, %s1148_s19   ;;  %p734_p3 = scmp.ne.s32.totalorder %s1168_s24, 0 }
  0x8d   : > { %s1453_s10 = scalar_lea.vmem [#allocation8], %s283_s26  ;;  %v1191_v0 = vmov (!%p734_p3), 0.0  }
  0x8e   : > { %289 = sbr.rel (%p734_p3) target bundleno = 149 (0x95), region = 56  ;;  %290 = vst [vmem:[%s1453_s10] sm:$0x1] (!%p734_p3), %v1191_v0 }
  0x95 PF: > { %v946_v1 = vld [vmem:[#allocation5 + $0x40] sm:$0xff]   ;;  %v1192_v3 = vmov 0.0   ;;  %v948_v4 = vld [vmem:[#allocation5 + $0x48] sm:$0xff]   ;;  %v950_v6 = vld [vmem:[#allocation5 + $0x50] sm:$0xff]   ;;  %vm1193_vm0 = vmmov 0   ;;  %s1575_s8 = sld [smem:[#allocation19_spill]] }
  0x96   : > { %v947_v2 = vld [vmem:[#allocation5] sm:$0xff]   ;;  %798 = vmatprep.subr.bf16.mxu1 %v1192_v3  ;;  %767 = vmatprep.subr.bf16.mxu0 %v946_v1  ;;  %v949_v5 = vld [vmem:[#allocation5 + $0x8] sm:$0xff]   ;;  %v951_v7 = vld [vmem:[#allocation5 + $0x10] sm:$0xff]   ;;  %s1576_s2 = sld [smem:[#allocation21_spill]]  ;;  %p763_p1 = scmp.ne.s32.totalorder %s1168_s24, 1 }
  0x97   : > { %768 = vmatpush3.bf16.msra.mxu0 %v947_v2  ;;  %v952_v8 = vld [vmem:[#allocation5 + $0x58] sm:$0xff]   ;;  %v954_v10 = vld [vmem:[#allocation5 + $0x60] sm:$0xff]   ;;  %v956_v12 = vld [vmem:[#allocation5 + $0x68] sm:$0xff]   ;;  %814 = vmatprep.mubr.msk.bf16.mxu1 %vm1193_vm0, %v1192_v3 }
  0x98   : > { %769 = vmatprep.subr.bf16.mxu0 %v948_v4  ;;  %v953_v9 = vld [vmem:[#allocation5 + $0x18] sm:$0xff]   ;;  %v955_v11 = vld [vmem:[#allocation5 + $0x20] sm:$0xff]   ;;  %v957_v16 = vld [vmem:[#allocation5 + $0x28] sm:$0xff]  }
  0x99   : > { %v291_v13 = vld [vmem:[%s251_s3] sm:$0xff]  ;;  %v964_v15 = vld [vmem:[#allocation7] sm:$0xff]   ;;  %v965_v18 = vld [vmem:[#allocation7 + $0x8] sm:$0xff]  }
  0x9a   : > { %v737_v14 = vcombine.high %v291_v13, %v291_v13  ;;  %v958_v17 = vld [vmem:[#allocation5 + $0x70] sm:$0xff]   ;;  %799 = vmatpush3.bf16.msra.mxu1 %v964_v15  ;;  %v960_v20 = vld [vmem:[#allocation5 + $0x78] sm:$0xff]   ;;  %v736_v24 = vcombine.low %v291_v13, %v291_v13  ;;  %v968_v25 = vld [vmem:[#allocation7 + $0x20] sm:$0xff]  }
  0x9b   : > { %770 = vmatpush3.bf16.msra.mxu0 %v949_v5  ;;  %800 = vmatprep.subr.bf16.mxu1 %v1192_v3  ;;  %v959_v19 = vld [vmem:[#allocation5 + $0x30] sm:$0xff]   ;;  %v961_v22 = vld [vmem:[#allocation5 + $0x38] sm:$0xff]   ;;  %v969_v26 = vld [vmem:[#allocation7 + $0x28] sm:$0xff]  }
  0x9c   : > { %771 = vmatprep.subr.bf16.mxu0 %v950_v6  ;;  %466 = vmatprep.mubr.bf16.mxu0 %v737_v14  ;;  %v966_v21 = vld [vmem:[#allocation7 + $0x10] sm:$0xff]   ;;  %v967_v23 = vld [vmem:[#allocation7 + $0x18] sm:$0xff]  }
  0x9d   : > { %v970_v27 = vld [vmem:[#allocation7 + $0x30] sm:$0xff]   ;;  %v971_v28 = vld [vmem:[#allocation7 + $0x38] sm:$0xff]  }
  0x9e   : > { %801 = vmatpush3.bf16.msra.mxu1 %v965_v18  ;;  %v735_v30 = vld [vmem:[%s1575_s8] ss:$0 sm:$0xff] }
  0x9f   : > { %772 = vmatpush3.bf16.msra.mxu0 %v951_v7  ;;  %802 = vmatprep.subr.bf16.mxu1 %v1192_v3  ;;  %v754_v39 = vld [vmem:[%s1576_s2] ss:$0 sm:$0xff] }
  0xa0   : > { %773 = vmatprep.subr.bf16.mxu0 %v952_v8  ;;  %v598_v52 = vld [vmem:[%s1453_s10] sm:$0x1] }
  0xa2   : > { %803 = vmatpush3.bf16.msra.mxu1 %v966_v21 }
  0xa3   : > { %774 = vmatpush3.bf16.msra.mxu0 %v953_v9  ;;  %804 = vmatprep.subr.bf16.mxu1 %v1192_v3 }
  0xa4   : > { %775 = vmatprep.subr.bf16.mxu0 %v954_v10 }
  0xa6   : > { %805 = vmatpush3.bf16.msra.mxu1 %v967_v23 }
  0xa7   : > { %776 = vmatpush3.bf16.msra.mxu0 %v955_v11  ;;  %806 = vmatprep.subr.bf16.mxu1 %v1192_v3 }
  0xa8   : > { %777 = vmatprep.subr.bf16.mxu0 %v956_v12 }
  0xaa   : > { %807 = vmatpush3.bf16.msra.mxu1 %v968_v25 }
  0xab   : > { %778 = vmatpush3.bf16.msra.mxu0 %v957_v16  ;;  %808 = vmatprep.subr.bf16.mxu1 %v1192_v3 }
  0xac   : > { %779 = vmatprep.subr.bf16.mxu0 %v958_v17 }
  0xae   : > { %809 = vmatpush3.bf16.msra.mxu1 %v969_v26 }
  0xaf   : > { %780 = vmatpush3.bf16.msra.mxu0 %v959_v19  ;;  %810 = vmatprep.subr.bf16.mxu1 %v1192_v3 }
  0xb0   : > { %781 = vmatprep.subr.bf16.mxu0 %v960_v20 }
  0xb2   : > { %811 = vmatpush3.bf16.msra.mxu1 %v970_v27 }
  0xb3   : > { %782 = vmatpush3.bf16.msra.mxu0 %v961_v22  ;;  %812 = vmatprep.subr.bf16.mxu1 %v1192_v3 }
  0xb6   : > { %467 = vmatmul.mubr.bf16.vlgmr.msra.gmra.mrb[0].mxu0 %v736_v24  ;;  %813 = vmatpush3.bf16.msra.mxu1 %v971_v28 }
 0x189   : > { %v783_v29 = vpop.f32.mrb[0].mxu0 }
 0x18a   : > { %v784_v31 = vpop.f32.mrb[1].mxu0 }
 0x18b   : > { %v785_v32 = vadd.f32 %v784_v31, %v783_v29  ;;  %v786_v33 = vpop.f32.mrb[2].mxu0 }
 0x18c   : > { %v787_v34 = vpop.f32.mrb[3].mxu0 }
 0x18d   : > { %v469_v35 = vadd.f32 %v785_v32, %v735_v30 }
 0x18f   : > { %v475_v36 = vmul.f32 0.01, %v469_v35  ;;  %vm474_vm1 = vcmp.gt.f32.partialorder %v469_v35, 0.0 }
 0x191   : > { %v476_v37 = vsel %vm474_vm1, %v469_v35, %v475_v36 }
 0x192   : > { %v477_v38 = vpack.c.bf16 %v476_v37, %v476_v37 }
 0x194   : > { %815 = vmatmul.mubr.bf16.vlgmr.msra.gmra.mrb[0].mxu1 %v477_v38 }
 0x267   : > { %v583_v40 = vpop.f32.mrb[0].mxu1 }
 0x268   : > { %v584_v41 = vadd.f32 %v754_v39, %v583_v40  ;;  %v816_v42 = vpop.f32.mrb[1].mxu1 }
 0x269   : > { %v586_v43 = vpop.f32.mrb[2].mxu1 }
 0x26a   : > { %vm589_vm2 = vcmp.gt.f32.partialorder %v584_v41, 0.0  ;;  %v590_v44 = vmul.f32 0.01, %v584_v41  ;;  %v817_v45 = vpop.f32.mrb[3].mxu1 }
 0x26c   : > { %v591_v46 = vsel %vm589_vm2, %v584_v41, %v590_v44 }
 0x26d   : > { %v592_v47 = vrot.slane %v591_v46, 4 }
 0x26f   : > { %v593_v48 = vadd.f32 %v592_v47, %v591_v46 }
 0x271   : > { %v594_v49 = vrot.slane %v593_v48, 2 }
 0x273   : > { %v595_v50 = vadd.f32 %v594_v49, %v593_v48 }
 0x275   : > { %v596_v51 = vrot.slane %v595_v50, 1  ;;  %604 = sbr.rel (%p763_p1) target bundleno = 646 (0x286), region = 60 }
 0x277   : > { %v597_v53 = vadd.f32 %v596_v51, %v595_v50 }
 0x279   : > { %v599_v54 = vadd.f32 %v598_v52, %v597_v53 }
 0x27b   : > { %600 = vst [vmem:[%s1453_s10] sm:$0x1] %v599_v54 }
 0x282   : > { %v605_v55 = vld [vmem:[%s1453_s10] sm:$0x1] }
 0x283   : > { %v606_v56 = vmul.f32 0.0625, %v605_v55 }
 0x285   : > { %607 = vst [vmem:[%s1453_s10] sm:$0x1] %v606_v56 }
 0x286 PF: > { %s1577_s4 = sld [smem:[#allocation13_spill]]  ;;  %s1578_s25 = sld [smem:[#allocation15_spill]] }
 0x287   : > { %s1579_s16 = sld [smem:[#allocation22_spill]]  ;;  %s621_s30 = sshll.u32 %s1453_s10, 4  ;;  %s622_s30 = int_to_ptr.vmem [resolvable:$true] %s621_s30 }
 0x288   : > { %s609_s24 = scalar_lea.sflag [#allocation4], %s283_s26  ;;  %s1058_s11 = scalar_lea.vmem %s622_s30, 16 }
 0x289   : > { %p1059_p4 = scmp.ne.s32.totalorder %s622_s30, %s1058_s11  ;;  %s1194_s14 = smov [#allocation8]  }
 0x28a   : > { %s1062_s18 = sshll.u32 %s1194_s14, 4  ;;  %s1063_s18 = int_to_ptr.vmem [resolvable:$false] %s1062_s18 }
 0x28b   : > { %s1064_s3 = scalar_lea.vmem %s1063_s18, 32  ;;  %p1065_p11 = scmp.lt.s32.totalorder %s622_s30, %s1063_s18 }
 0x28c   : > { %s764_s21 = sshll.u32 %s1577_s4, 4  ;;  %p1580_p6 = scmp.ne.s32.totalorder %s1578_s25, 0 }
 0x28d   : > { %s1474_s17 = scalar_lea.hbm %s1579_s16, %s764_s21  ;;  %p1066_p5 = scmp.lt.s32.totalorder %s1064_s3, %s1058_s11 }
 0x28e   : > { %p1060_p13 = pnand %p1059_p4, %p1580_p6 }
 0x28f   : > { %p1067_p8 = por %p1066_p5, %p1065_p11 }
 0x290   : > { %p1061_p10 = pneg %p1060_p13 }
 0x292   : > { %p1068_p12 = pnand %p1067_p8, %p1061_p10 }
 0x294   : > { %1071 = shalt.err (!%p1068_p12)
}
 0x295   : > { %s1072_s26 = scalar_lea.hbm %s1474_s17, 16  ;;  %s1076_s7 = scalar_lea.hbm %s1579_s16, 32 }
 0x296   : > { %p1073_p2 = scmp.ne.s32.totalorder %s1474_s17, %s1072_s26  ;;  %p1077_p0 = scmp.lt.u32.totalorder %s1474_s17, %s1579_s16 }
 0x297   : > { %p1078_p3 = scmp.lt.u32.totalorder %s1076_s7, %s1072_s26  ;;  %p1080_p4 = scmp.lt.u32.totalorder %s1072_s26, %s1474_s17 }
 0x298   : > { %p1074_p9 = pnand %p1073_p2, %p1580_p6 }
 0x299   : > { %p1079_p1 = por %p1078_p3, %p1077_p0 }
 0x29a   : > { %p1075_p7 = pneg %p1074_p9 }
 0x29b   : > { %p1081_p13 = por %p1080_p4, %p1079_p1 }
 0x29d   : > { %p1082_p10 = pnand %p1081_p13, %p1075_p7 }
 0x29f   : > { %1085 = shalt.err (!%p1082_p10)
}
 0x2a0   : > { %828 = dma.vmem_to_hbm [thread:$0]  (%p1580_p6), %s622_s30, 16, %s1474_s17, %s609_s24  }
 0x2a1 PF: > { %s1581_s1 = sld [smem:[#allocation12_spill]]  ;;  %s1582_s2 = sld [smem:[#allocation16_spill]] }
 0x2a2   : > { %p850_p11 = scmp.ge.s32.totalorder %s1184_s28, 2 }
 0x2a7   : > { %s633_s4 = sand.u32 1, %s1581_s1   ;;  %p1583_p5 = scmp.ne.s32.totalorder %s1582_s2, 0 }
 0x2a8   : > { %s634_s21 = scalar_lea.sflag [#allocation4], %s633_s4 }
 0x2a9   : > { %p842_p8 = pnand %p850_p11, %p1583_p5 }
 0x2ab   : > { %1139 = dma.done.wait (!%p842_p8), %s634_s21, 16  }
 0x2ac   : > { %1141 = vsyncadd (!%p842_p8), %s634_s21, 4294967280  ;;  %s22_s28 = sadd.s32 1, %s1184_s28   ;;  %s1584_s24 = sld [smem:[#allocation14_spill]] }
 0x2ad   : > { %p19_p12 = scmp.ge.s32.totalorder %s22_s28, 6   ;;  %s1585_s26 = sld [smem:[#allocation17_spill]] }
 0x2ae   : > { %s1586_s18 = smov %s1148_s19  ;;  %s1587_s19 = smov %s1152_s20 }
 0x2af   : > { %s1588_s20 = smov %s1390_s12  ;;  %s1589_s21 = smov %s1160_s22 }
 0x2b0   : > { %s1590_s22 = smov %s1164_s23  ;;  %s1591_s23 = smov %s1393_s5 }
 0x2b1   : > { %s1592_s25 = smov %s1180_s27  ;;  %s1593_s27 = smov %s1599_s13 }
 0x2b2   :  { %21 = sbr.rel (!%p19_p12) target bundleno = 16 (0x10), region = 101 }
 0x2b9   :  { %638 = vsyncpa [#allocation3], 1 }
 0x2ba   :  { %640 = vsyncpa [#allocation3 + $0x1], 1 }
 0x2bb   :  { %641 = vsyncpa [#allocation6], 1 }
 0x2bc   :  { %642 = vsyncpa [#allocation4], 1 }
 0x2bd   :  { %644 = vsyncpa [#allocation4 + $0x1], 1 }

</bundles_post_ra>
